<compile_context>
chip_gen: v5e
topology: v5e:2x2
jax: 0.10.0
libtpu: 0.0.40
codegen_flags: <defaults>
</compile_context>

<pallas_src>
import functools

import jax
import jax.numpy as jnp
from jax.experimental import pallas as pl
from jax.experimental.pallas import tpu as pltpu


LANE = 128      # vreg lane width
SUB = 8         # vreg sublane count
TM_MAX = 2048   # rows per block -> 2048 * 128 * 4 B = 1 MiB per f32 input block


def _bce_conf_kernel(x_ref, y_ref, m_ref, out_ref, *, valid_rows, needs_row_mask):
    """One grid step: masked BCE over a (tm, 128) tile -> (1, 8, 128) partial sum."""
    tm = x_ref.shape[0]

    m = m_ref[...].astype(jnp.float32)
    x = x_ref[...].astype(jnp.float32) * m      # masked predictions
    y = y_ref[...].astype(jnp.float32) * m      # masked targets

    # PyTorch clamps the log terms at -100 (before multiplying, so 0*log(0)=0).
    log_x = jnp.maximum(jnp.log(x), -100.0)
    log_1mx = jnp.maximum(jnp.log1p(-x), -100.0)
    # -(y*log(x) + (1-y)*log(1-x)) rearranged to save one VPU multiply.
    loss = -(log_1mx + y * (log_x - log_1mx))

    if needs_row_mask:
        # Only traced when the last grid block can be pipeline-padded.  Applied
        # after the logs (garbage may be NaN/Inf) and before the sum.
        i = pl.program_id(0)
        row = jax.lax.broadcasted_iota(jnp.int32, (tm, LANE), 0) + i * tm
        loss = jnp.where(row < valid_rows, loss, 0.0)

    # VPU-only partial reduce: collapse sublane groups onto one (8,128) vreg.
    partial = jnp.sum(loss.reshape(tm // SUB, SUB, LANE), axis=0)
    out_ref[...] = partial.reshape(1, SUB, LANE)


def bce_loss_conf(inputs, targets, mask, *, tm_max=TM_MAX):
    """Pallas implementation of BCELoss_Conf.forward (mean-reduced masked BCE)."""
    n_elems = inputs.size
    assert targets.size == n_elems and mask.size == n_elems
    assert n_elems > 0

    tm_max = max(SUB, (tm_max // SUB) * SUB)   # always a multiple of 8

    # Pad granularity:
    #  * Large arrays (more than one block): only lane (128) alignment is
    #    required -- tm will be tm_max (a multiple of 8) and ragged tail rows
    #    are masked in-kernel.  Avoids a full-array pad copy for the common
    #    128-aligned-but-not-1024-aligned case.
    #  * Small arrays (single block): pad to a full (8,128) vreg so the
    #    sublane-group reduce needs no special casing; the copy there is tiny.
    rows_lane = pl.cdiv(n_elems, LANE)
    pad_unit = LANE if rows_lane > tm_max else SUB * LANE
    padded = pl.cdiv(n_elems, pad_unit) * pad_unit

    def _prep(a):
        flat = a.reshape(-1)                       # free (contiguous bitcast)
        if padded != n_elems:
            # TODO(synk): this pad is a full-array XLA copy; it is only hit
            # when the element count is not already 128-aligned (rare for
            # image-shaped data).  Zero pad gives exactly 0 loss.
            flat = jnp.pad(flat, (0, padded - n_elems))
        return flat.reshape(padded // LANE, LANE)  # free

    x2, y2, m2 = _prep(inputs), _prep(targets), _prep(mask)
    rows = x2.shape[0]
    tm = min(tm_max, rows)                 # multiple of SUB by construction
    grid = pl.cdiv(rows, tm)
    needs_row_mask = (rows % tm) != 0      # static: mask only if pipeline pads

    kernel = functools.partial(
        _bce_conf_kernel, valid_rows=rows, needs_row_mask=needs_row_mask)
    in_spec = pl.BlockSpec((tm, LANE), lambda i: (i, 0))

    partials = pl.pallas_call(
        kernel,
        out_shape=jax.ShapeDtypeStruct((grid, SUB, LANE), jnp.float32),
        grid_spec=pltpu.PrefetchScalarGridSpec(
            num_scalar_prefetch=0,
            grid=(grid,),
            in_specs=[in_spec, in_spec, in_spec],
            out_specs=pl.BlockSpec((1, SUB, LANE), lambda i: (i, 0, 0)),
        ),
        compiler_params=pltpu.CompilerParams(
            # Every step is independent -> megacore sharding on v7x.
            dimension_semantics=("parallel",),
        ),
    )(x2, y2, m2)

    # Tiny final reduce in the wrapper; divide by the ORIGINAL element count.
    return jnp.sum(partials) / jnp.float32(n_elems)


def _reference(inputs, targets, mask):
    x = (inputs * mask).astype(jnp.float32)
    y = (targets * mask).astype(jnp.float32)
    log_x = jnp.maximum(jnp.log(x), -100.0)
    log_1mx = jnp.maximum(jnp.log1p(-x), -100.0)
    return jnp.mean(-(y * log_x + (1.0 - y) * log_1mx))


if __name__ == "__main__":
    key = jax.random.PRNGKey(0)

    # Case 1: segmentation-style NCHW, element count divisible by 1024
    # (single block, no pad, no in-kernel mask).
    k1, k2, k3, key = jax.random.split(key, 4)
    B, C, H, W = 2, 4, 16, 16
    inputs = jax.nn.sigmoid(jax.random.normal(k1, (B, C, H, W), dtype=jnp.float32))
    targets = jax.random.bernoulli(k2, 0.5, (B, C, H, W)).astype(jnp.float32)
    mask = jax.random.bernoulli(k3, 0.7, (B, C, H, W)).astype(jnp.float32)

    loss = bce_loss_conf(inputs, targets, mask)
    jax.block_until_ready(loss)
    ref = _reference(inputs, targets, mask)
    assert jnp.allclose(loss, ref, rtol=1e-5, atol=1e-5), (loss, ref)

    # Case 2: ragged element count (not 128-aligned) + small tm_max to exercise
    # grid > 1, the wrapper pad fallback, and the in-kernel tail-row masking.
    k1, k2, k3, key = jax.random.split(key, 4)
    B2, C2, H2, W2 = 3, 5, 40, 40   # 24000 elements (not a multiple of 128)
    inputs2 = jax.nn.sigmoid(jax.random.normal(k1, (B2, C2, H2, W2), dtype=jnp.float32))
    targets2 = jax.random.bernoulli(k2, 0.5, (B2, C2, H2, W2)).astype(jnp.float32)
    mask2 = jax.random.bernoulli(k3, 0.7, (B2, C2, H2, W2)).astype(jnp.float32)

    loss2 = bce_loss_conf(inputs2, targets2, mask2, tm_max=80)
    jax.block_until_ready(loss2)
    ref2 = _reference(inputs2, targets2, mask2)
    assert jnp.allclose(loss2, ref2, rtol=1e-5, atol=1e-5), (loss2, ref2)

    # Case 3: 128-aligned but multi-block with a ragged last block -> no wrapper
    # pad at all, in-kernel row mask only (the optimized common-large path).
    k1, k2, k3, key = jax.random.split(key, 4)
    B3, C3, H3, W3 = 1, 3, 80, 128   # 30720 elements (240 rows of 128)
    inputs3 = jax.nn.sigmoid(jax.random.normal(k1, (B3, C3, H3, W3), dtype=jnp.float32))
    targets3 = jax.random.bernoulli(k2, 0.5, (B3, C3, H3, W3)).astype(jnp.float32)
    mask3 = jax.random.bernoulli(k3, 0.7, (B3, C3, H3, W3)).astype(jnp.float32)

    loss3 = bce_loss_conf(inputs3, targets3, mask3, tm_max=64)
    jax.block_until_ready(loss3)
    ref3 = _reference(inputs3, targets3, mask3)
    assert jnp.allclose(loss3, ref3, rtol=1e-5, atol=1e-5), (loss3, ref3)

    print("KERNEL_OK")
</pallas_src>

<mosaic_0001>
module attributes {stable_mosaic.version = 11 : i64} {
  func.func @_bce_conf_kernel(%arg0: i32, %arg1: memref<16x128xf32, #tpu.memory_space<vmem>>, %arg2: memref<16x128xf32, #tpu.memory_space<vmem>>, %arg3: memref<16x128xf32, #tpu.memory_space<vmem>>, %arg4: memref<1x8x128xf32, #tpu.memory_space<vmem>>) attributes {dimension_semantics = [#tpu.dimension_semantics<parallel>], iteration_bounds = array<i64: 1>, scalar_prefetch = 0 : i64, scratch_operands = 0 : i64, tpu.core_type = #tpu.core_type<tc>, window_params = [{transform_indices = @transform_0, window_bounds = array<i64: 16, 128>}, {transform_indices = @transform_1, window_bounds = array<i64: 16, 128>}, {transform_indices = @transform_2, window_bounds = array<i64: 16, 128>}, {transform_indices = @transform_3, window_bounds = array<i64: 1, 8, 128>}]} {
    %c0 = arith.constant 0 : index
    %c0_0 = arith.constant 0 : index
    %0 = vector.load %arg3[%c0, %c0_0] : memref<16x128xf32, #tpu.memory_space<vmem>>, vector<16x128xf32>
    %c0_1 = arith.constant 0 : index
    %c0_2 = arith.constant 0 : index
    %1 = vector.load %arg1[%c0_1, %c0_2] : memref<16x128xf32, #tpu.memory_space<vmem>>, vector<16x128xf32>
    %2 = arith.mulf %1, %0 : vector<16x128xf32>
    %c0_3 = arith.constant 0 : index
    %c0_4 = arith.constant 0 : index
    %3 = vector.load %arg2[%c0_3, %c0_4] : memref<16x128xf32, #tpu.memory_space<vmem>>, vector<16x128xf32>
    %4 = arith.mulf %3, %0 : vector<16x128xf32>
    %5 = math.log %2 : vector<16x128xf32>
    %cst = arith.constant -1.000000e+02 : f32
    %6 = vector.broadcast %cst : f32 to vector<16x128xf32>
    %7 = arith.maximumf %5, %6 : vector<16x128xf32>
    %cst_5 = arith.constant 0.000000e+00 : f32
    %8 = vector.broadcast %cst_5 : f32 to vector<16x128xf32>
    %9 = arith.subf %8, %2 : vector<16x128xf32>
    %10 = math.log1p %9 : vector<16x128xf32>
    %cst_6 = arith.constant -1.000000e+02 : f32
    %11 = vector.broadcast %cst_6 : f32 to vector<16x128xf32>
    %12 = arith.maximumf %10, %11 : vector<16x128xf32>
    %13 = arith.subf %7, %12 : vector<16x128xf32>
    %14 = arith.mulf %4, %13 : vector<16x128xf32>
    %15 = arith.addf %12, %14 : vector<16x128xf32>
    %cst_7 = arith.constant 0.000000e+00 : f32
    %16 = vector.broadcast %cst_7 : f32 to vector<16x128xf32>
    %17 = arith.subf %16, %15 : vector<16x128xf32>
    %18 = vector.shape_cast %17 : vector<16x128xf32> to vector<2x8x128xf32>
    %cst_8 = arith.constant dense<0.000000e+00> : vector<8x128xf32>
    %19 = vector.multi_reduction <add>, %18, %cst_8 [0] : vector<2x8x128xf32> to vector<8x128xf32>
    %20 = vector.shape_cast %19 : vector<8x128xf32> to vector<1x8x128xf32>
    %c0_9 = arith.constant 0 : index
    %c0_10 = arith.constant 0 : index
    %c0_11 = arith.constant 0 : index
    %21 = vector.load %arg4[%c0_9, %c0_10, %c0_11] : memref<1x8x128xf32, #tpu.memory_space<vmem>>, vector<1x8x128xf32>
    tpu.vector_store %arg4[%c0_9, %c0_10, %c0_11], %20 {strides = array<i32>} : memref<1x8x128xf32, #tpu.memory_space<vmem>>, vector<1x8x128xf32>,
    return
  }
  func.func @transform_0(%arg0: i32) -> (i32, i32) {
    %c0_i32 = arith.constant 0 : i32
    %c0_i32_0 = arith.constant 0 : i32
    return %arg0, %c0_i32 : i32, i32
  }
  func.func @transform_1(%arg0: i32) -> (i32, i32) {
    %c0_i32 = arith.constant 0 : i32
    %c0_i32_0 = arith.constant 0 : i32
    return %arg0, %c0_i32 : i32, i32
  }
  func.func @transform_2(%arg0: i32) -> (i32, i32) {
    %c0_i32 = arith.constant 0 : i32
    %c0_i32_0 = arith.constant 0 : i32
    return %arg0, %c0_i32 : i32, i32
  }
  func.func @transform_3(%arg0: i32) -> (i32, i32, i32) {
    %c0_i32 = arith.constant 0 : i32
    %c0_i32_0 = arith.constant 0 : i32
    %c0_i32_1 = arith.constant 0 : i32
    return %arg0, %c0_i32, %c0_i32_0 : i32, i32, i32
  }
}

</mosaic_0001>

<bundles_post_ra>
// kernel: tpu_custom_call.1
= control target key start
LH: loop header
LB: loop body
LE: loop exit
PB: predicated region body
PF: predicated region fallthrough
CT: control target
= control target key end

     0   :  { %8 = vsyncpa [#allocation3], 0  ;;  %s282_s0 = inlined_call_operand.hbm [shape: f32[16,128], index: 0, kind: input, shape index: {}]   ;;  %s283_s1 = inlined_call_operand.hbm [shape: f32[16,128], index: 1, kind: input, shape index: {}]   ;;  %s284_s2 = inlined_call_operand.hbm [shape: f32[16,128], index: 2, kind: input, shape index: {}]   ;;  %s285_s3 = inlined_call_operand.hbm [shape: f32[1,8,128], index: 3, kind: output, shape index: {}]  }
   0x1   :  { %9 = vsyncpa [#allocation6], 0 }
   0x2   :  { %10 = vsyncpa [#allocation4], 0  ;;  %s28_s14 = sshll.u32 %s283_s1, 4  ;;  %s244_s15 = smov [#allocation5]   ;;  %s29_s14 = int_to_ptr.hbm [resolvable:$true] %s28_s14 }
   0x3   :  { %s30_s16 = sshll.u32 %s244_s15, 4  ;;  %s15_s19 = sshll.u32 %s282_s0, 4  ;;  %s31_s16 = int_to_ptr.vmem [resolvable:$true] %s30_s16  ;;  %s16_s19 = int_to_ptr.hbm [resolvable:$true] %s15_s19 }
   0x4   :  { %s245_s20 = smov 128   ;;  %s246_s21 = smov 8  }
   0x5   :  { %36 = dma.hbm_to_vmem [thread:$0]  %s29_s14, 256, %s31_s16, [#allocation6], %s245_s20, %s245_s20, %s246_s21  }
   0x6   :  { %s247_s22 = smov [#allocation2]   ;;  %s41_s26 = sshll.u32 %s284_s2, 4  ;;  %s42_s26 = int_to_ptr.hbm [resolvable:$true] %s41_s26 }
   0x7   :  { %s17_s23 = sshll.u32 %s247_s22, 4  ;;  %s248_s1 = smov [#allocation7]   ;;  %s18_s23 = int_to_ptr.vmem [resolvable:$true] %s17_s23 }
   0x8   :  { %23 = dma.hbm_to_vmem [thread:$0]  %s16_s19, 256, %s18_s23, [#allocation3], %s245_s20, %s245_s20, %s246_s21  }
   0x9   :  { %s43_s27 = sshll.u32 %s248_s1, 4  ;;  %s44_s27 = int_to_ptr.vmem [resolvable:$true] %s43_s27 }
   0xa   :  { %49 = dma.hbm_to_vmem [thread:$0]  %s42_s26, 256, %s44_s27, [#allocation6], %s245_s20, %s245_s20, %s246_s21  }
   0xb   :  { %238 = dma.done.wait [#allocation3], 256  }
   0xc   :  { %239 = vsyncadd [#allocation3], 4294967040 }
   0xd   :  { %240 = dma.done.wait [#allocation6], 512  }
   0xe   :  { %241 = vsyncadd [#allocation6], 4294966784  ;;  %v62_v0 = vld [vmem:[#allocation7] sm:$0xff]  ;;  %v63_v1 = vld [vmem:[#allocation7 + $0x8] sm:$0xff]  ;;  %s249_s0 = smov [#allocation8]   ;;  %s117_s30 = sshll.u32 %s285_s3, 4  ;;  %s118_s30 = int_to_ptr.hbm [resolvable:$true] %s117_s30 }
   0xf   :  { %v64_v2 = vld [vmem:[#allocation2] sm:$0xff]  ;;  %v65_v3 = vld [vmem:[#allocation2 + $0x8] sm:$0xff]  ;;  %v68_v24 = vld [vmem:[#allocation5] sm:$0xff]  ;;  %s115_s2 = sshll.u32 %s249_s0, 4  ;;  %s116_s2 = int_to_ptr.vmem [resolvable:$true] %s115_s2 }
  0x10   :  { %v66_v4 = vmul.f32 %v64_v2, %v62_v0  ;;  %v67_v5 = vmul.f32 %v65_v3, %v63_v1  ;;  %v69_v26 = vld [vmem:[#allocation5 + $0x8] sm:$0xff]  ;;  %v70_v31 = vmul.f32 %v68_v24, %v62_v0 }
  0x11   :  { %v71_v34 = vmul.f32 %v69_v26, %v63_v1 }
  0x12   :  { %134 = vlog2.f32 %v66_v4  ;;  %v78_v6 = vsub.f32 0.0, %v66_v4  ;;  %v79_v7 = vsub.f32 0.0, %v67_v5 }
  0x13   :  { %136 = vlog2.f32 %v67_v5 }
  0x14   :  { %v80_v8 = vadd.f32 1.0, %v78_v6  ;;  %v83_v9 = vmul.f32 -0.5, %v78_v6  ;;  %v89_v10 = vadd.f32 1.0, %v79_v7  ;;  %v92_v11 = vmul.f32 -0.5, %v79_v7 }
  0x15   :  { %v86_v14 = vand.u32 2147483647, %v78_v6  ;;  %v95_v17 = vand.u32 2147483647, %v79_v7 }
  0x16   :  { %138 = vlog2.f32 %v80_v8  ;;  %v84_v12 = vadd.f32 1.0, %v83_v9  ;;  %v93_v15 = vadd.f32 1.0, %v92_v11 }
  0x17   :  { %140 = vlog2.f32 %v89_v10  ;;  %vm87_vm0 = vcmp.lt.f32.partialorder %v86_v14, 0.0004427343  ;;  %vm96_vm1 = vcmp.lt.f32.partialorder %v95_v17, 0.0004427343 }
  0x18   :  { %v135_v13 = vpop.eup %134  ;;  %v85_v20 = vmul.f32 %v84_v12, %v78_v6  ;;  %v94_v22 = vmul.f32 %v93_v15, %v79_v7 }
  0x19   :  { %v137_v16 = vpop.eup %136  ;;  %v73_v18 = vmul.f32 0.6931472, %v135_v13 }
  0x1a   :  { %v75_v19 = vmul.f32 0.6931472, %v137_v16 }
  0x1b   :  { %v76_v27 = vmax.f32 %v73_v18, -100.0 }
  0x1c   :  { %v139_v21 = vpop.eup %138  ;;  %v77_v29 = vmax.f32 %v75_v19, -100.0 }
  0x1d   :  { %v141_v23 = vpop.eup %140  ;;  %v82_v25 = vmul.f32 0.6931472, %v139_v21 }
  0x1e   :  { %v91_v28 = vmul.f32 0.6931472, %v141_v23 }
  0x1f   :  { %v88_v30 = vsel %vm87_vm0, %v85_v20, %v82_v25 }
  0x20   :  { %v97_v32 = vsel %vm96_vm1, %v94_v22, %v91_v28  ;;  %v98_v33 = vmax.f32 %v88_v30, -100.0 }
  0x21   :  { %v99_v35 = vmax.f32 %v97_v32, -100.0 }
  0x22   :  { %v100_v36 = vsub.f32 %v76_v27, %v98_v33 }
  0x23   :  { %v101_v37 = vsub.f32 %v77_v29, %v99_v35 }
  0x24   :  { %v102_v38 = vmul.f32 %v100_v36, %v70_v31 }
  0x25   :  { %v103_v39 = vmul.f32 %v101_v37, %v71_v34 }
  0x26   :  { %v104_v40 = vadd.f32 %v102_v38, %v98_v33 }
  0x27   :  { %v105_v41 = vadd.f32 %v103_v39, %v99_v35 }
  0x28   :  { %v106_v42 = vsub.f32 0.0, %v104_v40 }
  0x29   :  { %v107_v43 = vsub.f32 0.0, %v105_v41 }
  0x2b   :  { %v108_v44 = vadd.f32 %v107_v43, %v106_v42 }
  0x2d   :  { %109 = vst [vmem:[#allocation8] sm:$0xff] %v108_v44 }
  0x2e   :  { %120 = dma.vmem_to_hbm [thread:$0]  %s116_s2, 128, %s118_s30, [#allocation4]  }
  0x2f   :  { %242 = dma.done.wait [#allocation4], 128  }
  0x30   :  { %243 = vsyncadd [#allocation4], 4294967168 }
  0x31   :  { %125 = vsyncpa [#allocation3], 1 }
  0x32   :  { %126 = vsyncpa [#allocation6], 1 }
  0x33   :  { %127 = vsyncpa [#allocation4], 1 }

</bundles_post_ra>
